<compile_context>
chip_gen: v6e
topology: v6e:2x2x1
jax: 0.10.0
libtpu: 0.0.40
codegen_flags: <defaults>
</compile_context>

<pallas_src>
import functools

import jax
import jax.numpy as jnp
from jax.experimental import pallas as pl
from jax.experimental.pallas import tpu as pltpu


HEAD_W = 128  # lane-padded width of the fused actor+critic head / output slab


def _round_up(x, m):
    return (x + m - 1) // m * m


# ----------------------------------------------------------------------------
# Pallas kernel: 3x (Linear + ReLU) + fused actor/critic head
# ----------------------------------------------------------------------------
def actor_critic_kernel(x_ref, w1_ref, w2_ref, w3_ref, wh_ref, bias_ref,
                        out_ref, *, action_size):
    x = x_ref[...]                       # [TB, S]   f32
    bias = bias_ref[...]                 # [8, 512]  f32 packed bias slab
    b1 = bias[0:1, :]                    # [1, 512]
    b2 = bias[1:2, 0:256]                # [1, 256]
    b3 = bias[2:3, 0:128]                # [1, 128]
    bh = bias[3:4, 0:HEAD_W]             # [1, 128]  (actor | critic | zero pad)

    # shared_fc1 + ReLU (bf16 operands on the MXU, f32 accumulate/epilogue)
    h = jnp.dot(x.astype(jnp.bfloat16), w1_ref[...],
                preferred_element_type=jnp.float32) + b1
    h = jnp.maximum(h, 0.0)
    # shared_fc2 + ReLU
    h = jnp.dot(h.astype(jnp.bfloat16), w2_ref[...],
                preferred_element_type=jnp.float32) + b2
    h = jnp.maximum(h, 0.0)
    # shared_fc3 + ReLU
    h = jnp.dot(h.astype(jnp.bfloat16), w3_ref[...],
                preferred_element_type=jnp.float32) + b3
    h = jnp.maximum(h, 0.0)

    # Fused head: lanes [0:A] = actor logits, lane A = critic value,
    # lanes [A+1:] = 0 (zero-padded weights / biases).
    head = jnp.dot(h.astype(jnp.bfloat16), wh_ref[...],
                   preferred_element_type=jnp.float32) + bh      # [TB, 128]

    lane = jax.lax.broadcasted_iota(jnp.int32, head.shape, dimension=1)
    actor_mask = lane < action_size

    # Masked softmax over the actor lanes only (f32; exp + recip on the EUP).
    neg_big = jnp.float32(-1e30)
    m = jnp.max(jnp.where(actor_mask, head, neg_big), axis=-1, keepdims=True)
    e = jnp.where(actor_mask, jnp.exp(head - m), 0.0)
    denom = jnp.sum(e, axis=-1, keepdims=True)
    probs = e * pl.reciprocal(denom, approx=True)
    probs = jnp.clip(probs, 1e-8, 1.0)

    # Lane-dense output slab: clamped probs in [0:A]; `head` elsewhere, which
    # is exactly the critic value at lane A and zeros in the padding lanes.
    out_ref[...] = jnp.where(actor_mask, probs, head)


# ----------------------------------------------------------------------------
# Wrapper
# ----------------------------------------------------------------------------
@functools.partial(jax.jit, static_argnames=("action_size", "block_b"))
def actor_critic_forward(state, params, action_size, block_b=128):
    """state: [B, state_size] f32 -> (action_probs [B, A], state_value [B, 1])."""
    w1, w2, w3, wh, biases = params
    B, S = state.shape

    # Batch tile: keep weights grid-resident, stream only the state tiles.
    tb = min(block_b, _round_up(B, 8))
    b_pad = _round_up(B, tb)
    if b_pad != B:
        state = jnp.pad(state, ((0, b_pad - B), (0, 0)))
    grid = (b_pad // tb,)

    kernel = functools.partial(actor_critic_kernel, action_size=action_size)

    out = pl.pallas_call(
        kernel,
        out_shape=jax.ShapeDtypeStruct((b_pad, HEAD_W), jnp.float32),
        grid=grid,
        in_specs=[
            pl.BlockSpec((tb, S), lambda i: (i, 0)),          # state tile streams
            pl.BlockSpec(w1.shape, lambda i: (0, 0)),         # weights resident
            pl.BlockSpec(w2.shape, lambda i: (0, 0)),
            pl.BlockSpec(w3.shape, lambda i: (0, 0)),
            pl.BlockSpec(wh.shape, lambda i: (0, 0)),
            pl.BlockSpec(biases.shape, lambda i: (0, 0)),
        ],
        out_specs=pl.BlockSpec((tb, HEAD_W), lambda i: (i, 0)),
        compiler_params=pltpu.CompilerParams(
            dimension_semantics=("parallel",)),               # megacore on v7x
    )(state, w1, w2, w3, wh, biases)

    action_probs = out[:B, :action_size]
    state_value = out[:B, action_size:action_size + 1]
    return action_probs, state_value


# ----------------------------------------------------------------------------
# Parameter init: orthogonal weights (gain sqrt(2)), zero biases — matching
# the PyTorch module.  Weights returned transposed ([in, out]) and in bf16;
# the actor/critic heads are packed into one lane-padded [128, 128] weight and
# the biases into one (8, 512) f32 slab.
# ----------------------------------------------------------------------------
def orthogonal_init(key, out_dim, in_dim, gain):
    big, small = max(out_dim, in_dim), min(out_dim, in_dim)
    a = jax.random.normal(key, (big, small), dtype=jnp.float32)
    q, r = jnp.linalg.qr(a)
    d = jnp.diagonal(r)
    q = q * jnp.where(d == 0, 1.0, jnp.sign(d))   # guard sign(0) == 0
    if out_dim < in_dim:
        q = q.T
    w = gain * q[:out_dim, :in_dim]
    return w.T.astype(jnp.float32)                # [in, out] layout


def init_params(key, state_size, action_size):
    gain = jnp.sqrt(2.0)
    keys = jax.random.split(key, 5)
    w1 = orthogonal_init(keys[0], 512, state_size, gain)    # [S, 512]
    w2 = orthogonal_init(keys[1], 256, 512, gain)           # [512, 256]
    w3 = orthogonal_init(keys[2], 128, 256, gain)           # [256, 128]
    wa = orthogonal_init(keys[3], action_size, 128, gain)   # [128, A]
    wc = orthogonal_init(keys[4], 1, 128, gain)              # [128, 1]

    # Fused, lane-padded head: cols [0:A] actor, col A critic, rest zero.
    wh = jnp.zeros((128, HEAD_W), jnp.float32)
    wh = wh.at[:, :action_size].set(wa)
    wh = wh.at[:, action_size].set(wc[:, 0])

    # Packed bias slab (all zeros per the reference init):
    #   row 0: b1[512], row 1: b2[256], row 2: b3[128], row 3: head bias[128].
    biases = jnp.zeros((8, 512), jnp.float32)

    # bf16 weights halve the dominant HBM traffic; accumulation stays f32.
    return (w1.astype(jnp.bfloat16), w2.astype(jnp.bfloat16),
            w3.astype(jnp.bfloat16), wh.astype(jnp.bfloat16), biases)


# ----------------------------------------------------------------------------
# Pure-JAX reference (f32 math with the same bf16-stored weights)
# ----------------------------------------------------------------------------
def reference_forward(state, params, action_size):
    w1, w2, w3, wh, biases = params
    w1, w2, w3, wh = (w.astype(jnp.float32) for w in (w1, w2, w3, wh))
    h = jnp.maximum(state @ w1 + biases[0:1, :], 0.0)
    h = jnp.maximum(h @ w2 + biases[1:2, :256], 0.0)
    h = jnp.maximum(h @ w3 + biases[2:3, :128], 0.0)
    head = h @ wh + biases[3:4, :HEAD_W]
    probs = jnp.clip(jax.nn.softmax(head[:, :action_size], axis=-1), 1e-8, 1.0)
    value = head[:, action_size:action_size + 1]
    return probs, value


if __name__ == "__main__":
    state_size = 16
    action_size = 8
    batch = 8

    key = jax.random.PRNGKey(0)
    k_param, k_state = jax.random.split(key)

    params = init_params(k_param, state_size, action_size)
    state = jax.random.normal(k_state, (batch, state_size), dtype=jnp.float32)

    action_probs, state_value = actor_critic_forward(state, params, action_size)
    jax.block_until_ready((action_probs, state_value))

    assert action_probs.shape == (batch, action_size)
    assert state_value.shape == (batch, 1)
    # probabilities valid: clamped to [1e-8, 1] and ~sum to 1 per row
    assert bool(jnp.all(action_probs >= 1e-8)) and bool(jnp.all(action_probs <= 1.0))
    assert bool(jnp.allclose(jnp.sum(action_probs, axis=-1), 1.0, atol=5e-3))

    # loose numerical check vs pure-JAX reference (bf16 matmuls in the kernel)
    ref_probs, ref_value = reference_forward(state, params, action_size)
    assert bool(jnp.allclose(action_probs, ref_probs, rtol=0.1, atol=0.1))
    assert bool(jnp.allclose(state_value, ref_value, rtol=0.1, atol=0.1))

    print("KERNEL_OK")
</pallas_src>

<mosaic_0001>
module attributes {stable_mosaic.version = 11 : i64} {
  func.func @actor_critic_kernel(%arg0: i32, %arg1: memref<8x16xf32, #tpu.memory_space<vmem>>, %arg2: memref<16x512xbf16, #tpu.memory_space<vmem>>, %arg3: memref<512x256xbf16, #tpu.memory_space<vmem>>, %arg4: memref<256x128xbf16, #tpu.memory_space<vmem>>, %arg5: memref<128x128xbf16, #tpu.memory_space<vmem>>, %arg6: memref<8x512xf32, #tpu.memory_space<vmem>>, %arg7: memref<8x128xf32, #tpu.memory_space<vmem>>) attributes {dimension_semantics = [#tpu.dimension_semantics<parallel>], iteration_bounds = array<i64: 1>, scalar_prefetch = 0 : i64, scratch_operands = 0 : i64, tpu.core_type = #tpu.core_type<tc>, window_params = [{transform_indices = @transform_0, window_bounds = array<i64: 8, 16>}, {pipeline_mode = #tpu.pipeline_mode<synchronous>, transform_indices = @transform_1, window_bounds = array<i64: 16, 512>}, {pipeline_mode = #tpu.pipeline_mode<synchronous>, transform_indices = @transform_2, window_bounds = array<i64: 512, 256>}, {pipeline_mode = #tpu.pipeline_mode<synchronous>, transform_indices = @transform_3, window_bounds = array<i64: 256, 128>}, {pipeline_mode = #tpu.pipeline_mode<synchronous>, transform_indices = @transform_4, window_bounds = array<i64: 128, 128>}, {pipeline_mode = #tpu.pipeline_mode<synchronous>, transform_indices = @transform_5, window_bounds = array<i64: 8, 512>}, {transform_indices = @transform_6, window_bounds = array<i64: 8, 128>}]} {
    %c0 = arith.constant 0 : index
    %c0_0 = arith.constant 0 : index
    %0 = vector.load %arg1[%c0, %c0_0] : memref<8x16xf32, #tpu.memory_space<vmem>>, vector<8x16xf32>
    %c0_1 = arith.constant 0 : index
    %c0_2 = arith.constant 0 : index
    %1 = vector.load %arg6[%c0_1, %c0_2] : memref<8x512xf32, #tpu.memory_space<vmem>>, vector<8x512xf32>
    %2 = vector.extract_strided_slice %1 {offsets = [0, 0], sizes = [1, 512], strides = [1, 1]} : vector<8x512xf32> to vector<1x512xf32>
    %3 = vector.extract_strided_slice %1 {offsets = [1, 0], sizes = [1, 256], strides = [1, 1]} : vector<8x512xf32> to vector<1x256xf32>
    %4 = vector.extract_strided_slice %1 {offsets = [2, 0], sizes = [1, 128], strides = [1, 1]} : vector<8x512xf32> to vector<1x128xf32>
    %5 = vector.extract_strided_slice %1 {offsets = [3, 0], sizes = [1, 128], strides = [1, 1]} : vector<8x512xf32> to vector<1x128xf32>
    %6 = arith.truncf %0 : vector<8x16xf32> to vector<8x16xbf16>
    %c0_3 = arith.constant 0 : index
    %c0_4 = arith.constant 0 : index
    %7 = vector.load %arg2[%c0_3, %c0_4] : memref<16x512xbf16, #tpu.memory_space<vmem>>, vector<16x512xbf16>
    %cst = arith.constant dense<0.000000e+00> : vector<8x512xf32>
    %8 = tpu.matmul %6, %7, %cst {dimension_numbers = #tpu.dot_dimension_numbers<[1], [0], [0], [1], [0, 0, 1, 1], [], []>} : vector<8x16xbf16>, vector<16x512xbf16>, vector<8x512xf32> -> vector<8x512xf32>
    %9 = vector.broadcast %2 : vector<1x512xf32> to vector<8x512xf32>
    %10 = arith.addf %8, %9 : vector<8x512xf32>
    %cst_5 = arith.constant 0.000000e+00 : f32
    %11 = vector.broadcast %cst_5 : f32 to vector<8x512xf32>
    %12 = arith.maximumf %10, %11 : vector<8x512xf32>
    %13 = arith.truncf %12 : vector<8x512xf32> to vector<8x512xbf16>
    %c0_6 = arith.constant 0 : index
    %c0_7 = arith.constant 0 : index
    %14 = vector.load %arg3[%c0_6, %c0_7] : memref<512x256xbf16, #tpu.memory_space<vmem>>, vector<512x256xbf16>
    %cst_8 = arith.constant dense<0.000000e+00> : vector<8x256xf32>
    %15 = tpu.matmul %13, %14, %cst_8 {dimension_numbers = #tpu.dot_dimension_numbers<[1], [0], [0], [1], [0, 0, 1, 1], [], []>} : vector<8x512xbf16>, vector<512x256xbf16>, vector<8x256xf32> -> vector<8x256xf32>
    %16 = vector.broadcast %3 : vector<1x256xf32> to vector<8x256xf32>
    %17 = arith.addf %15, %16 : vector<8x256xf32>
    %cst_9 = arith.constant 0.000000e+00 : f32
    %18 = vector.broadcast %cst_9 : f32 to vector<8x256xf32>
    %19 = arith.maximumf %17, %18 : vector<8x256xf32>
    %20 = arith.truncf %19 : vector<8x256xf32> to vector<8x256xbf16>
    %c0_10 = arith.constant 0 : index
    %c0_11 = arith.constant 0 : index
    %21 = vector.load %arg4[%c0_10, %c0_11] : memref<256x128xbf16, #tpu.memory_space<vmem>>, vector<256x128xbf16>
    %cst_12 = arith.constant dense<0.000000e+00> : vector<8x128xf32>
    %22 = tpu.matmul %20, %21, %cst_12 {dimension_numbers = #tpu.dot_dimension_numbers<[1], [0], [0], [1], [0, 0, 1, 1], [], []>} : vector<8x256xbf16>, vector<256x128xbf16>, vector<8x128xf32> -> vector<8x128xf32>
    %23 = vector.broadcast %4 : vector<1x128xf32> to vector<8x128xf32>
    %24 = arith.addf %22, %23 : vector<8x128xf32>
    %cst_13 = arith.constant 0.000000e+00 : f32
    %25 = vector.broadcast %cst_13 : f32 to vector<8x128xf32>
    %26 = arith.maximumf %24, %25 : vector<8x128xf32>
    %27 = arith.truncf %26 : vector<8x128xf32> to vector<8x128xbf16>
    %c0_14 = arith.constant 0 : index
    %c0_15 = arith.constant 0 : index
    %28 = vector.load %arg5[%c0_14, %c0_15] : memref<128x128xbf16, #tpu.memory_space<vmem>>, vector<128x128xbf16>
    %cst_16 = arith.constant dense<0.000000e+00> : vector<8x128xf32>
    %29 = tpu.matmul %27, %28, %cst_16 {dimension_numbers = #tpu.dot_dimension_numbers<[1], [0], [0], [1], [0, 0, 1, 1], [], []>} : vector<8x128xbf16>, vector<128x128xbf16>, vector<8x128xf32> -> vector<8x128xf32>
    %30 = vector.broadcast %5 : vector<1x128xf32> to vector<8x128xf32>
    %31 = arith.addf %29, %30 : vector<8x128xf32>
    %32 = tpu.iota {dimensions = array<i32: 1>} : vector<8x128xi32>
    %c8_i32 = arith.constant 8 : i32
    %33 = vector.broadcast %c8_i32 : i32 to vector<8x128xi32>
    %34 = arith.cmpi slt, %32, %33 : vector<8x128xi32>
    %cst_17 = arith.constant -1.000000e+30 : f32
    %35 = vector.broadcast %cst_17 : f32 to vector<8x128xf32>
    %36 = arith.select %34, %31, %35 : vector<8x128xi1>, vector<8x128xf32>
    %cst_18 = arith.constant dense<0xFF800000> : vector<8xf32>
    %37 = vector.multi_reduction <maximumf>, %36, %cst_18 [1] : vector<8x128xf32> to vector<8xf32>
    %38 = vector.shape_cast %37 : vector<8xf32> to vector<8x1xf32>
    %39 = vector.broadcast %38 : vector<8x1xf32> to vector<8x128xf32>
    %40 = arith.subf %31, %39 : vector<8x128xf32>
    %41 = math.exp %40 : vector<8x128xf32>
    %cst_19 = arith.constant 0.000000e+00 : f32
    %42 = vector.broadcast %cst_19 : f32 to vector<8x128xf32>
    %43 = arith.select %34, %41, %42 : vector<8x128xi1>, vector<8x128xf32>
    %cst_20 = arith.constant dense<0.000000e+00> : vector<8xf32>
    %44 = vector.multi_reduction <add>, %43, %cst_20 [1] : vector<8x128xf32> to vector<8xf32>
    %45 = vector.shape_cast %44 : vector<8xf32> to vector<8x1xf32>
    %46 = tpu.reciprocal %45 {approx = true} : vector<8x1xf32> -> vector<8x1xf32>
    %47 = vector.broadcast %46 : vector<8x1xf32> to vector<8x128xf32>
    %48 = arith.mulf %43, %47 : vector<8x128xf32>
    %cst_21 = arith.constant 9.99999993E-9 : f32
    %cst_22 = arith.constant 1.000000e+00 : f32
    %49 = vector.broadcast %cst_21 : f32 to vector<8x128xf32>
    %50 = arith.maximumf %49, %48 : vector<8x128xf32>
    %51 = vector.broadcast %cst_22 : f32 to vector<8x128xf32>
    %52 = arith.minimumf %51, %50 : vector<8x128xf32>
    %53 = arith.select %34, %52, %31 : vector<8x128xi1>, vector<8x128xf32>
    %c0_23 = arith.constant 0 : index
    %c0_24 = arith.constant 0 : index
    %54 = vector.load %arg7[%c0_23, %c0_24] : memref<8x128xf32, #tpu.memory_space<vmem>>, vector<8x128xf32>
    tpu.vector_store %arg7[%c0_23, %c0_24], %53 {strides = array<i32>} : memref<8x128xf32, #tpu.memory_space<vmem>>, vector<8x128xf32>,
    return
  }
  func.func @transform_0(%arg0: i32) -> (i32, i32) {
    %c0_i32 = arith.constant 0 : i32
    %c0_i32_0 = arith.constant 0 : i32
    return %arg0, %c0_i32 : i32, i32
  }
  func.func @transform_1(%arg0: i32) -> (i32, i32) {
    %c0_i32 = arith.constant 0 : i32
    %c0_i32_0 = arith.constant 0 : i32
    %c0_i32_1 = arith.constant 0 : i32
    return %c0_i32, %c0_i32_0 : i32, i32
  }
  func.func @transform_2(%arg0: i32) -> (i32, i32) {
    %c0_i32 = arith.constant 0 : i32
    %c0_i32_0 = arith.constant 0 : i32
    %c0_i32_1 = arith.constant 0 : i32
    return %c0_i32, %c0_i32_0 : i32, i32
  }
  func.func @transform_3(%arg0: i32) -> (i32, i32) {
    %c0_i32 = arith.constant 0 : i32
    %c0_i32_0 = arith.constant 0 : i32
    %c0_i32_1 = arith.constant 0 : i32
    return %c0_i32, %c0_i32_0 : i32, i32
  }
  func.func @transform_4(%arg0: i32) -> (i32, i32) {
    %c0_i32 = arith.constant 0 : i32
    %c0_i32_0 = arith.constant 0 : i32
    %c0_i32_1 = arith.constant 0 : i32
    return %c0_i32, %c0_i32_0 : i32, i32
  }
  func.func @transform_5(%arg0: i32) -> (i32, i32) {
    %c0_i32 = arith.constant 0 : i32
    %c0_i32_0 = arith.constant 0 : i32
    %c0_i32_1 = arith.constant 0 : i32
    return %c0_i32, %c0_i32_0 : i32, i32
  }
  func.func @transform_6(%arg0: i32) -> (i32, i32) {
    %c0_i32 = arith.constant 0 : i32
    %c0_i32_0 = arith.constant 0 : i32
    return %arg0, %c0_i32 : i32, i32
  }
}

</mosaic_0001>

<bundles_post_ra>
// kernel: actor_critic_forward.1
= control target key start
LH: loop header
LB: loop body
LE: loop exit
PB: predicated region body
PF: predicated region fallthrough
CT: control target
= control target key end

     0   :  { %11 = vsyncpa [#allocation3], 0  ;;  %s1544_s0 = inlined_call_operand.hbm [shape: f32[8,16], index: 0, kind: input, shape index: {}]   ;;  %s1545_s1 = inlined_call_operand.hbm [shape: bf16[16,512], index: 1, kind: input, shape index: {}]   ;;  %s1546_s2 = inlined_call_operand.hbm [shape: bf16[512,256], index: 2, kind: input, shape index: {}]   ;;  %s1547_s3 = inlined_call_operand.hbm [shape: bf16[256,128], index: 3, kind: input, shape index: {}]   ;;  %s1548_s4 = inlined_call_operand.hbm [shape: bf16[128,128], index: 4, kind: input, shape index: {}]   ;;  %s1549_s5 = inlined_call_operand.hbm [shape: f32[8,512], index: 5, kind: input, shape index: {}]   ;;  %s1550_s6 = inlined_call_operand.vmem [shape: f32[8,128], index: 6, kind: output, shape index: {}]  }
   0x1   :  { %12 = vsyncpa [#allocation5], 0 }
   0x2   :  { %13 = vsyncpa [#allocation8], 0 }
   0x3   :  { %14 = vsyncpa [#allocation11], 0  ;;  %s1446_s21 = smov [#allocation4]  }
   0x4   :  { %s30_s22 = sshll.u32 %s1446_s21, 4  ;;  %s31_s22 = int_to_ptr.vmem [resolvable:$true] %s30_s22 }
   0x5   :  { %s1326_s23 = scalar_lea.vmem %s31_s22, 512  ;;  %p1331_p1 = scmp.lt.s32.totalorder %s31_s22, %s31_s22 }
   0x6   :  { %p1327_p0 = scmp.ne.s32.totalorder %s31_s22, %s1326_s23  ;;  %p1332_p2 = scmp.lt.s32.totalorder %s1326_s23, %s1326_s23 }
   0x8   :  { %p1333_p3 = por %p1332_p2, %p1331_p1 }
   0xa   :  { %p1334_p4 = pnand %p1333_p3, %p1327_p0 }
   0xc   :  { %1337 = shalt.err (!%p1334_p4)
}
   0xd   :  { %s1447_s24 = smov 256   ;;  %s1448_s25 = smov 16  }
   0xe   :  { %36 = dma.hbm_to_vmem [thread:$0]  %s1545_s1, 512, %s31_s22, [#allocation5], %s1447_s24, %s1447_s24, %s1448_s25  }
   0xf   :  { %s1449_s28 = smov [#allocation7]  }
  0x10   :  { %s54_s29 = sshll.u32 %s1449_s28, 4  ;;  %s55_s29 = int_to_ptr.vmem [resolvable:$true] %s54_s29 }
  0x11   :  { %s1346_s30 = scalar_lea.vmem %s55_s29, 2048  ;;  %p1351_p6 = scmp.lt.s32.totalorder %s55_s29, %s55_s29 }
  0x12   :  { %p1347_p5 = scmp.ne.s32.totalorder %s55_s29, %s1346_s30  ;;  %p1352_p7 = scmp.lt.s32.totalorder %s1346_s30, %s1346_s30 }
  0x14   :  { %p1353_p8 = por %p1352_p7, %p1351_p6 }
  0x16   :  { %p1354_p9 = pnand %p1353_p8, %p1347_p5 }
  0x18   :  { %1357 = shalt.err (!%p1354_p9)
}
  0x19   :  { %s1450_s7 = smov 64   ;;  %s1451_s8 = smov 4  }
  0x1a   :  { %60 = dma.hbm_to_vmem [thread:$0]  %s1547_s3, 2048, %s55_s29, [#allocation8], %s1450_s7, %s1450_s7, %s1451_s8  }
  0x1b   :  { %s1452_s1 = smov [#allocation2]   ;;  %s1453_s12 = smov [#allocation6]  }
  0x1c   :  { %s21_s11 = sshll.u32 %s1452_s1, 4  ;;  %s42_s13 = sshll.u32 %s1453_s12, 4  ;;  %s22_s11 = int_to_ptr.vmem [resolvable:$true] %s21_s11  ;;  %s43_s13 = int_to_ptr.vmem [resolvable:$true] %s42_s13 }
  0x1d   :  { %s1366_s14 = scalar_lea.vmem %s22_s11, 128  ;;  %p1371_p11 = scmp.lt.s32.totalorder %s22_s11, %s22_s11 }
  0x1e   :  { %p1367_p10 = scmp.ne.s32.totalorder %s22_s11, %s1366_s14  ;;  %p1372_p12 = scmp.lt.s32.totalorder %s1366_s14, %s1366_s14 }
  0x20   :  { %p1373_p13 = por %p1372_p12, %p1371_p11 }
  0x22   :  { %p1374_p0 = pnand %p1373_p13, %p1367_p10 }
  0x24   :  { %1377 = shalt.err (!%p1374_p0)
}
  0x25   :  { %24 = dma.hbm_to_vmem [thread:$0]  %s1544_s0, 128, %s22_s11, [#allocation3]  }
  0x26   :  { %s1386_s17 = scalar_lea.vmem %s43_s13, 8192  ;;  %p1391_p2 = scmp.lt.s32.totalorder %s43_s13, %s43_s13 }
  0x27   :  { %p1387_p1 = scmp.ne.s32.totalorder %s43_s13, %s1386_s17  ;;  %p1392_p3 = scmp.lt.s32.totalorder %s1386_s17, %s1386_s17 }
  0x29   :  { %p1393_p4 = por %p1392_p3, %p1391_p2 }
  0x2b   :  { %p1394_p5 = pnand %p1393_p4, %p1387_p1 }
  0x2d   :  { %1397 = shalt.err (!%p1394_p5)
}
  0x2e   :  { %s1454_s3 = smov 128   ;;  %s1455_s18 = smov 8  }
  0x2f   :  { %48 = dma.hbm_to_vmem [thread:$0]  %s1546_s2, 8192, %s43_s13, [#allocation5], %s1454_s3, %s1454_s3, %s1455_s18  }
  0x30   :  { %s1456_s21 = smov [#allocation9]   ;;  %s1457_s23 = smov [#allocation10]  }
  0x31   :  { %s66_s22 = sshll.u32 %s1456_s21, 4  ;;  %s79_s24 = sshll.u32 %s1457_s23, 4  ;;  %s67_s22 = int_to_ptr.vmem [resolvable:$true] %s66_s22  ;;  %s80_s24 = int_to_ptr.vmem [resolvable:$true] %s79_s24 }
  0x32   :  { %s1406_s0 = scalar_lea.vmem %s67_s22, 1024  ;;  %p1411_p7 = scmp.lt.s32.totalorder %s67_s22, %s67_s22 }
  0x33   :  { %p1407_p6 = scmp.ne.s32.totalorder %s67_s22, %s1406_s0  ;;  %p1412_p8 = scmp.lt.s32.totalorder %s1406_s0, %s1406_s0 }
  0x35   :  { %p1413_p9 = por %p1412_p8, %p1411_p7 }
  0x37   :  { %p1414_p10 = pnand %p1413_p9, %p1407_p6 }
  0x39   :  { %1417 = shalt.err (!%p1414_p10)
}
  0x3a   :  { %72 = dma.hbm_to_vmem [thread:$0]  %s1548_s4, 1024, %s67_s22, [#allocation8], %s1450_s7, %s1450_s7, %s1451_s8  }
  0x3b   :  { %s1426_s2 = scalar_lea.vmem %s80_s24, 512  ;;  %p1431_p12 = scmp.lt.s32.totalorder %s80_s24, %s80_s24 }
  0x3c   :  { %p1427_p11 = scmp.ne.s32.totalorder %s80_s24, %s1426_s2  ;;  %p1432_p13 = scmp.lt.s32.totalorder %s1426_s2, %s1426_s2 }
  0x3e   :  { %p1433_p0 = por %p1432_p13, %p1431_p12 }
  0x40   :  { %p1434_p1 = pnand %p1433_p0, %p1427_p11 }
  0x42   :  { %1437 = shalt.err (!%p1434_p1)
}
  0x43   :  { %82 = dma.hbm_to_vmem [thread:$0]  %s1549_s5, 512, %s80_s24, [#allocation11]  }
  0x44   :  { %1438 = dma.done.wait [#allocation3], 128  }
  0x45   :  { %1439 = vsyncadd [#allocation3], 4294967168 }
  0x46   :  { %1440 = dma.done.wait [#allocation5], 8704  }
  0x47   :  { %1441 = vsyncadd [#allocation5], 4294958592 }
  0x48   :  { %1442 = dma.done.wait [#allocation8], 3072  }
  0x49   :  { %1443 = vsyncadd [#allocation8], 4294964224 }
  0x4a   :  { %1444 = dma.done.wait [#allocation11], 512  }
  0x4b   :  { %1445 = vsyncadd [#allocation11], 4294966784  ;;  %v1458_v0 = vmov 0   ;;  %v1188_v1 = vld [vmem:[#allocation4 + $0x4] ss:$16 sps:$4 sm:$0xff]   ;;  %v102_v5 = vld [vmem:[#allocation2] sm:$0xff] }
  0x4c   :  { %184 = vmatprep.mubr.bf16.mxu0 %v1458_v0  ;;  %225 = vmatprep.mubr.bf16.mxu1 %v1458_v0  ;;  %v1190_v2 = vld [vmem:[#allocation4 + $0xc] ss:$16 sps:$4 sm:$0xff]   ;;  %v1192_v3 = vld [vmem:[#allocation4] ss:$16 sps:$4 sm:$0xff]   ;;  %v1193_v4 = vld [vmem:[#allocation4 + $0x8] ss:$16 sps:$4 sm:$0xff]   ;;  %v107_v6 = vpack.c.bf16 %v102_v5, %v102_v5 }
  0x4d   :  { %166 = vmatprep.subr.bf16.mxu0 %v1188_v1  ;;  %207 = vmatprep.subr.bf16.mxu1 %v1190_v2  ;;  %v1194_v7 = vld [vmem:[#allocation6 + $0x70] ss:$8 sps:$4 sm:$0xff]   ;;  %vm148_vm0 = vcmask 130048   ;;  %v1196_v8 = vld [vmem:[#allocation6 + $0x74] ss:$8 sps:$4 sm:$0xff]   ;;  %vm1460_vm1 = vmmov 0  }
  0x4e   :  { %167 = vmatpush1.bf16.msra.mxu0 %v1192_v3  ;;  %208 = vmatpush1.bf16.msra.mxu1 %v1193_v4  ;;  %v1197_v9 = vld [vmem:[#allocation6 + $0x170] ss:$8 sps:$4 sm:$0xff]   ;;  %v1199_v10 = vld [vmem:[#allocation6 + $0x174] ss:$8 sps:$4 sm:$0xff]   ;;  %v1202_v11 = vld [vmem:[#allocation6 + $0x64] ss:$8 sps:$4 sm:$0xff]  }
  0x4f   :  { %634 = vmatprep.subr.bf16.mxu0 %v1196_v8  ;;  %v1200_v12 = vld [vmem:[#allocation6 + $0x60] ss:$8 sps:$4 sm:$0xff]   ;;  %675 = vmatprep.subr.bf16.mxu1 %v1199_v10  ;;  %v1205_v13 = vld [vmem:[#allocation6 + $0x164] ss:$8 sps:$4 sm:$0xff]   ;;  %v1208_v15 = vld [vmem:[#allocation6 + $0x54] ss:$8 sps:$4 sm:$0xff]   ;;  %v112_v8 = vlaneseq }
  0x50   :  { %v1203_v14 = vld [vmem:[#allocation6 + $0x160] ss:$8 sps:$4 sm:$0xff]   ;;  %v1211_v16 = vld [vmem:[#allocation6 + $0x154] ss:$8 sps:$4 sm:$0xff]   ;;  %v1206_v17 = vld [vmem:[#allocation6 + $0x50] ss:$8 sps:$4 sm:$0xff]  }
  0x51   :  { %1032 = vmatmul.mubr.msk.bf16.vlgmr.msra.gmra.mxu0 %vm148_vm0, %v107_v6  ;;  %1033 = vmatmul.mubr.msk.bf16.vlgmr.msra.gmra.mxu1 %vm148_vm0, %v107_v6  ;;  %v1209_v18 = vld [vmem:[#allocation6 + $0x150] ss:$8 sps:$4 sm:$0xff]   ;;  %v1214_v19 = vld [vmem:[#allocation6 + $0x44] ss:$8 sps:$4 sm:$0xff]   ;;  %v1212_v21 = vld [vmem:[#allocation6 + $0x40] ss:$8 sps:$4 sm:$0xff]  }
  0x52   :  { %635 = vmatpush1.bf16.msra.mxu0 %v1194_v7  ;;  %676 = vmatpush1.bf16.msra.mxu1 %v1197_v9  ;;  %v1217_v20 = vld [vmem:[#allocation6 + $0x144] ss:$8 sps:$4 sm:$0xff]   ;;  %v1215_v22 = vld [vmem:[#allocation6 + $0x140] ss:$8 sps:$4 sm:$0xff]   ;;  %v1220_v23 = vld [vmem:[#allocation6 + $0x34] ss:$8 sps:$4 sm:$0xff]  }
  0x53   :  { %636 = vmatprep.subr.bf16.mxu0 %v1202_v11  ;;  %677 = vmatprep.subr.bf16.mxu1 %v1205_v13  ;;  %v1223_v24 = vld [vmem:[#allocation6 + $0x134] ss:$8 sps:$4 sm:$0xff]   ;;  %v1218_v25 = vld [vmem:[#allocation6 + $0x30] ss:$8 sps:$4 sm:$0xff]   ;;  %v1226_v27 = vld [vmem:[#allocation6 + $0x24] ss:$8 sps:$4 sm:$0xff]  }
  0x54   :  { %v1221_v26 = vld [vmem:[#allocation6 + $0x130] ss:$8 sps:$4 sm:$0xff]   ;;  %v1229_v28 = vld [vmem:[#allocation6 + $0x124] ss:$8 sps:$4 sm:$0xff]   ;;  %v1224_v29 = vld [vmem:[#allocation6 + $0x20] ss:$8 sps:$4 sm:$0xff]  }
  0x55   :  { %v1227_v30 = vld [vmem:[#allocation6 + $0x120] ss:$8 sps:$4 sm:$0xff]   ;;  %v1232_v31 = vld [vmem:[#allocation6 + $0x14] ss:$8 sps:$4 sm:$0xff]   ;;  %v1230_v33 = vld [vmem:[#allocation6 + $0x10] ss:$8 sps:$4 sm:$0xff]  }
  0x56   :  { %637 = vmatpush1.bf16.msra.mxu0 %v1200_v12  ;;  %678 = vmatpush1.bf16.msra.mxu1 %v1203_v14  ;;  %v1235_v32 = vld [vmem:[#allocation6 + $0x114] ss:$8 sps:$4 sm:$0xff]   ;;  %v1233_v34 = vld [vmem:[#allocation6 + $0x110] ss:$8 sps:$4 sm:$0xff]   ;;  %v1238_v35 = vld [vmem:[#allocation6 + $0x4] ss:$8 sps:$4 sm:$0xff]  }
  0x57   :  { %638 = vmatprep.subr.bf16.mxu0 %v1208_v15  ;;  %679 = vmatprep.subr.bf16.mxu1 %v1211_v16  ;;  %v1241_v36 = vld [vmem:[#allocation6 + $0x104] ss:$8 sps:$4 sm:$0xff]   ;;  %v1236_v37 = vld [vmem:[#allocation6] ss:$8 sps:$4 sm:$0xff]   ;;  %v1244_v39 = vld [vmem:[#allocation6 + $0xf4] ss:$8 sps:$4 sm:$0xff]  }
  0x58   :  { %v1239_v38 = vld [vmem:[#allocation6 + $0x100] ss:$8 sps:$4 sm:$0xff]   ;;  %v1247_v40 = vld [vmem:[#allocation6 + $0x1f4] ss:$8 sps:$4 sm:$0xff]   ;;  %v1242_v41 = vld [vmem:[#allocation6 + $0xf0] ss:$8 sps:$4 sm:$0xff]  }
  0x59   :  { %v1245_v42 = vld [vmem:[#allocation6 + $0x1f0] ss:$8 sps:$4 sm:$0xff]   ;;  %v1250_v43 = vld [vmem:[#allocation6 + $0xe4] ss:$8 sps:$4 sm:$0xff]   ;;  %v1248_v44 = vld [vmem:[#allocation6 + $0xe0] ss:$8 sps:$4 sm:$0xff]  }
  0x5a   :  { %639 = vmatpush1.bf16.msra.mxu0 %v1206_v17  ;;  %680 = vmatpush1.bf16.msra.mxu1 %v1209_v18  ;;  %v1253_v45 = vld [vmem:[#allocation6 + $0x1e4] ss:$8 sps:$4 sm:$0xff]   ;;  %v1251_v46 = vld [vmem:[#allocation6 + $0x1e0] ss:$8 sps:$4 sm:$0xff]   ;;  %v1256_v47 = vld [vmem:[#allocation6 + $0xd4] ss:$8 sps:$4 sm:$0xff]  }
  0x5b   :  { %640 = vmatprep.subr.bf16.mxu0 %v1214_v19  ;;  %681 = vmatprep.subr.bf16.mxu1 %v1217_v20  ;;  %v1259_v48 = vld [vmem:[#allocation6 + $0x1d4] ss:$8 sps:$4 sm:$0xff]   ;;  %v1254_v49 = vld [vmem:[#allocation6 + $0xd0] ss:$8 sps:$4 sm:$0xff]   ;;  %v1262_v51 = vld [vmem:[#allocation6 + $0xc4] ss:$8 sps:$4 sm:$0xff]  }
  0x5c   :  { %v1257_v50 = vld [vmem:[#allocation6 + $0x1d0] ss:$8 sps:$4 sm:$0xff]   ;;  %v1265_v52 = vld [vmem:[#allocation6 + $0x1c4] ss:$8 sps:$4 sm:$0xff]   ;;  %v1260_v53 = vld [vmem:[#allocation6 + $0xc0] ss:$8 sps:$4 sm:$0xff]  }
  0x5d   :  { %v1263_v54 = vld [vmem:[#allocation6 + $0x1c0] ss:$8 sps:$4 sm:$0xff]   ;;  %v1268_v55 = vld [vmem:[#allocation6 + $0xb4] ss:$8 sps:$4 sm:$0xff]   ;;  %v1266_v57 = vld [vmem:[#allocation6 + $0xb0] ss:$8 sps:$4 sm:$0xff]  }
  0x5e   :  { %641 = vmatpush1.bf16.msra.mxu0 %v1212_v21  ;;  %682 = vmatpush1.bf16.msra.mxu1 %v1215_v22  ;;  %v1271_v56 = vld [vmem:[#allocation6 + $0x1b4] ss:$8 sps:$4 sm:$0xff]   ;;  %v1269_v58 = vld [vmem:[#allocation6 + $0x1b0] ss:$8 sps:$4 sm:$0xff]   ;;  %v1274_v59 = vld [vmem:[#allocation6 + $0xa4] ss:$8 sps:$4 sm:$0xff]  }
  0x5f   :  { %642 = vmatprep.subr.bf16.mxu0 %v1220_v23  ;;  %683 = vmatprep.subr.bf16.mxu1 %v1223_v24  ;;  %v1277_v60 = vld [vmem:[#allocation6 + $0x1a4] ss:$8 sps:$4 sm:$0xff]   ;;  %v1272_v61 = vld [vmem:[#allocation6 + $0xa0] ss:$8 sps:$4 sm:$0xff]   ;;  %v1278_v63 = vld [vmem:[#allocation6 + $0x90] ss:$8 sps:$4 sm:$0xff]  }
  0x60   :  { %v1275_v62 = vld [vmem:[#allocation6 + $0x1a0] ss:$8 sps:$4 sm:$0xff]   ;;  %v1280_v0 = vld [vmem:[#allocation6 + $0x94] ss:$8 sps:$4 sm:$0xff]   ;;  %v1281_v1 = vld [vmem:[#allocation6 + $0x190] ss:$8 sps:$4 sm:$0xff]  }
  0x61   :  { %v1283_v2 = vld [vmem:[#allocation6 + $0x194] ss:$8 sps:$4 sm:$0xff]   ;;  %v1286_v3 = vld [vmem:[#allocation6 + $0x84] ss:$8 sps:$4 sm:$0xff]   ;;  %v1284_v5 = vld [vmem:[#allocation6 + $0x80] ss:$8 sps:$4 sm:$0xff]  }
  0x62   :  { %643 = vmatpush1.bf16.msra.mxu0 %v1218_v25  ;;  %684 = vmatpush1.bf16.msra.mxu1 %v1221_v26  ;;  %v1289_v4 = vld [vmem:[#allocation6 + $0x184] ss:$8 sps:$4 sm:$0xff]   ;;  %v1287_v6 = vld [vmem:[#allocation6 + $0x180] ss:$8 sps:$4 sm:$0xff]   ;;  %v1290_v7 = vld [vmem:[#allocation7 + $0x78] sm:$0xff]   ;;  %v1521_v9 = vshrl.u32 %v112_v8, 7 }
  0x63   :  { %644 = vmatprep.subr.bf16.mxu0 %v1226_v27  ;;  %685 = vmatprep.subr.bf16.mxu1 %v1229_v28  ;;  %v1524_v11 = vld [vmem:[#allocation10] sm:$0xff]  ;;  %v105_v12 = vld [vmem:[#allocation10 + $0x10] sm:$0xff]  ;;  %v1526_v13 = vld [vmem:[#allocation10 + $0x8] sm:$0xff] }
  0x64   :  { %v114_v10 = vsub.s32 0, %v1521_v9  ;;  %v106_v14 = vld [vmem:[#allocation10 + $0x18] sm:$0xff] }
  0x66   :  { %645 = vmatpush1.bf16.msra.mxu0 %v1224_v29  ;;  %686 = vmatpush1.bf16.msra.mxu1 %v1227_v30  ;;  %v115_v15 = vrot.slane %v1524_v11, %v114_v10  ;;  %v123_v16 = vrot.slane %v105_v12, %v114_v10  ;;  %v119_v17 = vrot.slane %v1526_v13, %v114_v10 }
  0x67   :  { %646 = vmatprep.subr.bf16.mxu0 %v1232_v31  ;;  %687 = vmatprep.subr.bf16.mxu1 %v1235_v32  ;;  %v127_v18 = vrot.slane %v106_v14, %v114_v10 }
  0x6a   :  { %647 = vmatpush1.bf16.msra.mxu0 %v1230_v33  ;;  %688 = vmatpush1.bf16.msra.mxu1 %v1233_v34 }
  0x6b   :  { %648 = vmatprep.subr.bf16.mxu0 %v1238_v35  ;;  %689 = vmatprep.subr.bf16.mxu1 %v1241_v36 }
  0x6e   :  { %649 = vmatpush1.bf16.msra.mxu0 %v1236_v37  ;;  %690 = vmatpush1.bf16.msra.mxu1 %v1239_v38  ;;  %v1291_v38 = vld [vmem:[#allocation7 + $0x38] sm:$0xff]  }
  0x6f   :  { %650 = vmatprep.subr.bf16.mxu0 %v1244_v39  ;;  %691 = vmatprep.subr.bf16.mxu1 %v1247_v40  ;;  %v1292_v40 = vld [vmem:[#allocation7 + $0x70] sm:$0xff]  }
  0x72   :  { %651 = vmatpush2.bf16.msra.mxu0 %v1242_v41  ;;  %692 = vmatpush2.bf16.msra.mxu1 %v1245_v42  ;;  %v1293_v41 = vld [vmem:[#allocation7 + $0x30] sm:$0xff]   ;;  %v1294_v42 = vld [vmem:[#allocation7 + $0x68] sm:$0xff]  }
  0x73   :  { %652 = vmatprep.subr.bf16.mxu0 %v1250_v43  ;;  %693 = vmatprep.subr.bf16.mxu1 %v1253_v45  ;;  %v1295_v43 = vld [vmem:[#allocation7 + $0x28] sm:$0xff]   ;;  %v1297_v45 = vld [vmem:[#allocation7 + $0x20] sm:$0xff]  }
  0x76   :  { %653 = vmatpush2.bf16.msra.mxu0 %v1248_v44  ;;  %694 = vmatpush2.bf16.msra.mxu1 %v1251_v46  ;;  %v1296_v44 = vld [vmem:[#allocation7 + $0x60] sm:$0xff]   ;;  %v1298_v46 = vld [vmem:[#allocation7 + $0x58] sm:$0xff]  }
  0x77   :  { %654 = vmatprep.subr.bf16.mxu0 %v1256_v47  ;;  %695 = vmatprep.subr.bf16.mxu1 %v1259_v48  ;;  %v1299_v47 = vld [vmem:[#allocation7 + $0x18] sm:$0xff]   ;;  %v1300_v48 = vld [vmem:[#allocation7 + $0x50] sm:$0xff]  }
  0x7a   :  { %655 = vmatpush2.bf16.msra.mxu0 %v1254_v49  ;;  %696 = vmatpush2.bf16.msra.mxu1 %v1257_v50  ;;  %v1301_v49 = vld [vmem:[#allocation7 + $0x10] sm:$0xff]   ;;  %v1302_v50 = vld [vmem:[#allocation7 + $0x48] sm:$0xff]  }
  0x7b   :  { %656 = vmatprep.subr.bf16.mxu0 %v1262_v51  ;;  %697 = vmatprep.subr.bf16.mxu1 %v1265_v52  ;;  %v1303_v51 = vld [vmem:[#allocation7 + $0x8] sm:$0xff]   ;;  %v1304_v52 = vld [vmem:[#allocation7 + $0x40] sm:$0xff]  }
  0x7e   :  { %657 = vmatpush2.bf16.msra.mxu0 %v1260_v53  ;;  %698 = vmatpush2.bf16.msra.mxu1 %v1263_v54  ;;  %v1305_v53 = vld [vmem:[#allocation7] sm:$0xff]   ;;  %v1306_v54 = vld [vmem:[#allocation9 + $0x38] sm:$0xff]  }
  0x7f   :  { %658 = vmatprep.subr.bf16.mxu0 %v1268_v55  ;;  %699 = vmatprep.subr.bf16.mxu1 %v1271_v56  ;;  %v1459_v55 = vmov 0.0   ;;  %v1307_v56 = vld [vmem:[#allocation9 + $0x30] sm:$0xff]  }
  0x82   :  { %659 = vmatpush2.bf16.msra.mxu0 %v1266_v57  ;;  %700 = vmatpush2.bf16.msra.mxu1 %v1269_v58  ;;  %v1308_v57 = vld [vmem:[#allocation9 + $0x28] sm:$0xff]   ;;  %v1309_v58 = vld [vmem:[#allocation9 + $0x20] sm:$0xff]  }
  0x83   :  { %660 = vmatprep.subr.bf16.mxu0 %v1274_v59  ;;  %701 = vmatprep.subr.bf16.mxu1 %v1277_v60  ;;  %v1310_v59 = vld [vmem:[#allocation9 + $0x18] sm:$0xff]   ;;  %v308_v60 = vsub.s32 1, %v1521_v9 }
  0x86   :  { %661 = vmatpush2.bf16.msra.mxu0 %v1272_v61  ;;  %702 = vmatpush2.bf16.msra.mxu1 %v1275_v62  ;;  %v309_v61 = vrot.slane %v1524_v11, %v308_v60  ;;  %v313_v62 = vrot.slane %v1526_v13, %v308_v60  ;;  %v1312_v13 = vld [vmem:[#allocation9 + $0x8] sm:$0xff]  }
  0x87   :  { %662 = vmatprep.subr.bf16.mxu0 %v1280_v0  ;;  %703 = vmatprep.subr.bf16.mxu1 %v1283_v2 }
  0x8a   :  { %663 = vmatpush2.bf16.msra.mxu0 %v1278_v63  ;;  %704 = vmatpush2.bf16.msra.mxu1 %v1281_v1 }
  0x8b   :  { %664 = vmatprep.subr.bf16.mxu0 %v1286_v3  ;;  %705 = vmatprep.subr.bf16.mxu1 %v1289_v4 }
  0x8e   :  { %665 = vmatpush2.bf16.msra.mxu0 %v1284_v5  ;;  %706 = vmatpush2.bf16.msra.mxu1 %v1287_v6 }
  0x8f   :  { %1122 = vmatprep.subr.bf16.mxu0 %v1290_v7  ;;  %1153 = vmatprep.subr.bf16.mxu1 %v1459_v55 }
 0x111   :  { %v186_v19 = vpop.f32.mrf.mxu0  ;;  %v227_v20 = vpop.f32.mrf.mxu1 }
 0x112   :  { %v187_v21 = vadd.f32 %v186_v19, %v115_v15  ;;  %v228_v22 = vadd.f32 %v227_v20, %v123_v16  ;;  %v1311_v19 = vld [vmem:[#allocation9 + $0x10] sm:$0xff]   ;;  %v1313_v20 = vld [vmem:[#allocation9] sm:$0xff]  }
 0x113   :  { %v188_v23 = vpop.f32.mrf.mxu0  ;;  %v229_v24 = vpop.f32.mrf.mxu1 }
 0x114   :  { %v236_v25 = vmax.f32 %v228_v22, 0.0  ;;  %v189_v26 = vadd.f32 %v188_v23, %v119_v17  ;;  %v230_v27 = vadd.f32 %v229_v24, %v127_v18  ;;  %v234_v28 = vmax.f32 %v187_v21, 0.0 }
 0x115   :  { %v190_v29 = vpop.f32.mrf.mxu0  ;;  %v231_v30 = vpop.f32.mrf.mxu1  ;;  %v754_v21 = vsub.s32 2, %v1521_v9 }
 0x116   :  { %v235_v31 = vmax.f32 %v189_v26, 0.0  ;;  %v237_v32 = vmax.f32 %v230_v27, 0.0  ;;  %v240_v33 = vpack.c.bf16 %v236_v25, %v236_v25  ;;  %v238_v39 = vpack.c.bf16 %v234_v28, %v234_v28 }
 0x117   :  { %v191_v34 = vpop.f32.mrf.mxu0  ;;  %v232_v35 = vpop.f32.mrf.mxu1  ;;  %v755_v23 = vrot.slane %v1524_v11, %v754_v21 }
 0x118   :  { %v239_v36 = vpack.c.bf16 %v235_v31, %v235_v31  ;;  %v241_v37 = vpack.c.bf16 %v237_v32, %v237_v32  ;;  %v912_v31 = vsub.s32 3, %v1521_v9  ;;  %v1003_v32 = vand.u32 127, %v112_v8 }
 0x11a   :  { %666 = vmatprep.mubr.bf16.mxu0 %v239_v36  ;;  %707 = vmatprep.mubr.bf16.mxu1 %v241_v37  ;;  %vm1004_vm2 = vcmp.lt.s32.totalorder %v1003_v32, 8 }
 0x11b   :  { %667 = vmatmul.mubr.bf16.vlgmr.msra.gmra.mxu0 %v238_v39  ;;  %708 = vmatmul.mubr.bf16.vlgmr.msra.gmra.mxu1 %v240_v33  ;;  %v913_v33 = vrot.slane %v1524_v11, %v912_v31 }
 0x11c   :  { %1123 = vmatpush3.bf16.msra.mxu0 %v1291_v38  ;;  %1154 = vmatpush3.bf16.msra.mxu1 %v1306_v54 }
 0x11d   :  { %1124 = vmatprep.subr.bf16.mxu0 %v1292_v40  ;;  %1155 = vmatprep.subr.bf16.mxu1 %v1459_v55 }
 0x11e   :  { %1169 = vmatprep.mubr.msk.bf16.mxu1 %vm1460_vm1, %v1459_v55 }
 0x120   :  { %1125 = vmatpush3.bf16.msra.mxu0 %v1293_v41  ;;  %1156 = vmatpush3.bf16.msra.mxu1 %v1307_v56 }
 0x121   :  { %1126 = vmatprep.subr.bf16.mxu0 %v1294_v42  ;;  %1157 = vmatprep.subr.bf16.mxu1 %v1459_v55 }
 0x124   :  { %1127 = vmatpush3.bf16.msra.mxu0 %v1295_v43  ;;  %1158 = vmatpush3.bf16.msra.mxu1 %v1308_v57 }
 0x125   :  { %1128 = vmatprep.subr.bf16.mxu0 %v1296_v44  ;;  %1159 = vmatprep.subr.bf16.mxu1 %v1459_v55 }
 0x128   :  { %1129 = vmatpush3.bf16.msra.mxu0 %v1297_v45  ;;  %1160 = vmatpush3.bf16.msra.mxu1 %v1309_v58 }
 0x129   :  { %1130 = vmatprep.subr.bf16.mxu0 %v1298_v46  ;;  %1161 = vmatprep.subr.bf16.mxu1 %v1459_v55 }
 0x12c   :  { %1131 = vmatpush3.bf16.msra.mxu0 %v1299_v47  ;;  %1162 = vmatpush3.bf16.msra.mxu1 %v1310_v59 }
 0x12d   :  { %1132 = vmatprep.subr.bf16.mxu0 %v1300_v48  ;;  %1163 = vmatprep.subr.bf16.mxu1 %v1459_v55 }
 0x130   :  { %1133 = vmatpush3.bf16.msra.mxu0 %v1301_v49  ;;  %1164 = vmatpush3.bf16.msra.mxu1 %v1311_v19 }
 0x131   :  { %1134 = vmatprep.subr.bf16.mxu0 %v1302_v50  ;;  %1165 = vmatprep.subr.bf16.mxu1 %v1459_v55 }
 0x134   :  { %1135 = vmatpush3.bf16.msra.mxu0 %v1303_v51  ;;  %1166 = vmatpush3.bf16.msra.mxu1 %v1312_v13 }
 0x135   :  { %1136 = vmatprep.subr.bf16.mxu0 %v1304_v52  ;;  %1167 = vmatprep.subr.bf16.mxu1 %v1459_v55 }
 0x138   :  { %1137 = vmatpush3.bf16.msra.mxu0 %v1305_v53  ;;  %1168 = vmatpush3.bf16.msra.mxu1 %v1313_v20 }
 0x1db   :  { %v668_v63 = vpop.f32.mrf.mxu0  ;;  %v709_v0 = vpop.f32.mrf.mxu1 }
 0x1dc   :  { %v669_v1 = vadd.f32 %v668_v63, %v309_v61 }
 0x1dd   :  { %v670_v2 = vpop.f32.mrf.mxu0  ;;  %v711_v3 = vpop.f32.mrf.mxu1 }
 0x1de   :  { %v710_v4 = vadd.f32 %v709_v0, %v669_v1  ;;  %v671_v5 = vadd.f32 %v670_v2, %v313_v62 }
 0x1df   :  { %v672_v6 = vpop.f32.mrf.mxu0  ;;  %v713_v7 = vpop.f32.mrf.mxu1 }
 0x1e0   :  { %v712_v10 = vadd.f32 %v711_v3, %v671_v5  ;;  %v716_v12 = vmax.f32 %v710_v4, 0.0 }
 0x1e1   :  { %v673_v14 = vpop.f32.mrf.mxu0  ;;  %v714_v15 = vpop.f32.mrf.mxu1 }
 0x1e2   :  { %v717_v16 = vmax.f32 %v712_v10, 0.0  ;;  %v718_v18 = vpack.c.bf16 %v716_v12, %v716_v12 }
 0x1e4   :  { %v719_v17 = vpack.c.bf16 %v717_v16, %v717_v16 }
 0x1e6   :  { %884 = vmatprep.mubr.bf16.mxu0 %v719_v17 }
 0x1e7   :  { %885 = vmatmul.mubr.bf16.vlgmr.msra.gmra.mxu0 %v718_v18 }
 0x2a7   :  { %v1138_v22 = vpop.f32.mrf.mxu0 }
 0x2a9   :  { %v1139_v24 = vpop.f32.mrf.mxu0 }
 0x2aa   :  { %v1140_v25 = vadd.f32 %v1139_v24, %v1138_v22 }
 0x2ab   :  { %v1141_v26 = vpop.f32.mrf.mxu0 }
 0x2ac   :  { %v887_v27 = vadd.f32 %v1140_v25, %v755_v23 }
 0x2ad   :  { %v1142_v28 = vpop.f32.mrf.mxu0 }
 0x2ae   :  { %v892_v29 = vmax.f32 %v887_v27, 0.0 }
 0x2b0   :  { %v893_v30 = vpack.c.bf16 %v892_v29, %v892_v29 }
 0x2b2   :  { %1170 = vmatmul.mubr.bf16.vlgmr.msra.gmra.mxu1 %v893_v30 }
 0x372   :  { %v996_v34 = vpop.f32.mrf.mxu1 }
 0x373   :  { %v997_v35 = vadd.f32 %v996_v34, %v913_v33 }
 0x374   :  { %v1171_v36 = vpop.f32.mrf.mxu1 }
 0x375   :  { %v1005_v37 = vsel %vm1004_vm2, %v997_v35, -1e+30 }
 0x376   :  { %1006 = vmax.xlane.f32.xlu0 %v1005_v37  ;;  %v999_v38 = vpop.f32.mrf.mxu1 }
 0x378   :  { %v1172_v39 = vpop.f32.mrf.mxu1 }
 0x3ff   :  { %v1007_v40 = vpop.xlane.xlu0 %1006 }
 0x400   :  { %v1008_v41 = vsub.f32 %v997_v35, %v1007_v40 }
 0x402   :  { %v1009_v42 = vmul.f32 1.442695, %v1008_v41 }
 0x404   :  { %1314 = vpow2.f32 %v1009_v42 }
 0x411   :  { %v1315_v43 = vpop.eup %1314 }
 0x412   :  { %v1011_v9 = vsel %vm1004_vm2, %v1315_v43, 0.0 }
 0x413   :  { %1012 = vadd.xlane.f32.xlu0 %v1011_v9 }
 0x49c   :  { %v1013_v8 = vpop.xlane.xlu0 %1012 }
 0x49d   :  { %1316 = vrcp.f32 %v1013_v8 }
 0x4aa   :  { %v1317_v11 = vpop.eup %1316 }
 0x4ab   :  { %v1015_v44 = vmul.f32 %v1317_v11, %v1011_v9 }
 0x4ad   :  { %v1016_v45 = vmax.f32 %v1015_v44, 1e-08 }
 0x4af   :  { %v1017_v46 = vmin.f32 %v1016_v45, 1.0 }
 0x4b1   :  { %v1018_v47 = vsel %vm1004_vm2, %v1017_v46, %v997_v35 }
 0x4b2   :  { %1019 = vst [vmem:[%s1550_s6] sm:$0xff] %v1018_v47 }
 0x4b3   :  { %1024 = vsyncpa [#allocation3], 1 }
 0x4b4   :  { %1025 = vsyncpa [#allocation5], 1 }
 0x4b5   :  { %1026 = vsyncpa [#allocation8], 1 }
 0x4b6   :  { %1027 = vsyncpa [#allocation11], 1 }

</bundles_post_ra>
